<compile_context>
chip_gen: v7x
topology: tpu7x:2x2x1
jax: 0.10.0
libtpu: 0.0.40
codegen_flags: <defaults>
</compile_context>

<pallas_src>
import math

import jax
import jax.numpy as jnp
from jax.experimental import pallas as pl
from jax.experimental.pallas import tpu as pltpu


def _make_kernel(state_dim, action_dim, n_out):
    """Build the kernel for fixed (small) feature / output widths."""
    n_in = state_dim + action_dim

    def kernel(wb_ref, s_ref, a_ref, q_ref):
        # wb_ref: SMEM (n_out, n_in + 1); row o = [w_o0 ... w_o,n_in-1, b_o]
        # s_ref : VMEM (state_dim,  tm)  native dtype, batch on lanes
        # a_ref : VMEM (action_dim, tm)  native dtype, batch on lanes
        # q_ref : VMEM (n_out, tm) f32   lane-dense output
        s = s_ref[...].astype(jnp.float32)          # in-kernel .float()
        a = a_ref[...].astype(jnp.float32)
        tm = s.shape[1]
        for o in range(n_out):                      # n_out == 1 for a critic
            # bias, broadcast from an SMEM scalar
            acc = jnp.zeros((1, tm), jnp.float32) + wb_ref[o, n_in]
            # fused cat([state, action], 1) @ W.T  ==  sum_k w[k] * x[k, :]
            for k in range(state_dim):
                acc = acc + wb_ref[o, k] * s[k:k + 1, :]
            for k in range(action_dim):
                acc = acc + wb_ref[o, state_dim + k] * a[k:k + 1, :]
            q_ref[o:o + 1, :] = jnp.maximum(acc, 0.0)

    return kernel


def critic_forward(params, state, action, *, tm_max=8192):
    """relu(cat([state, action], 1) @ W.T + b), then torch-style squeeze."""
    B, ds = state.shape
    _, da = action.shape
    wb = params["wb"]                   # (n_out, n_in + 1) packed [W | b], f32
    n_out = wb.shape[0]
    n_in = ds + da

    # Batch-on-lanes presentation (layout plumbing only; no dtype casts here —
    # the kernel casts, so bf16/f16/int inputs DMA at their narrow width).
    s_t = state.T                       # (ds, B)
    a_t = action.T                      # (da, B)

    # Single full-array block for typical RL batch sizes; otherwise 128-aligned
    # lane tiles => >= 2 "parallel" grid blocks (sharded across both TCs on
    # v7x).  Ragged last block: OOB lanes are only touched by elementwise
    # mul/add/relu and their output writes are masked, so garbage is harmless.
    tm = B if B <= tm_max else tm_max   # tm_max must be a multiple of 128
    grid = (pl.cdiv(B, tm),)

    kernel = _make_kernel(ds, da, n_out)

    cost = pl.CostEstimate(
        flops=2 * B * n_in * n_out + B * n_out,
        transcendentals=0,
        bytes_accessed=(B * ds * state.dtype.itemsize
                        + B * da * action.dtype.itemsize
                        + B * n_out * 4 + int(wb.size) * 4),
    )

    q_t = pl.pallas_call(
        kernel,
        out_shape=jax.ShapeDtypeStruct((n_out, B), jnp.float32),
        grid=grid,
        in_specs=[
            pl.BlockSpec(memory_space=pltpu.MemorySpace.SMEM),   # packed [W|b]
            pl.BlockSpec((ds, tm), lambda i: (0, i)),            # state.T tile
            pl.BlockSpec((da, tm), lambda i: (0, i)),            # action.T tile
        ],
        out_specs=pl.BlockSpec((n_out, tm), lambda i: (0, i)),   # lane-dense q
        compiler_params=pltpu.CompilerParams(
            dimension_semantics=("parallel",)),
        cost_estimate=cost,
    )(wb, s_t, a_t)

    # torch.squeeze drops ALL size-1 dims.  q_t is (n_out, B); relabel back to
    # the torch (B, n_out) orientation first (a free degenerate-dim transpose
    # when n_out == 1) so semantics match exactly for any n_out.
    # Note: with B == 1 this yields a 0-d scalar, exactly like torch.squeeze.
    return jnp.squeeze(q_t.T)


def init_params(key, state_dim, action_dim, n_output):
    """xavier_uniform_(gain=calculate_gain('relu')) weight + default nn.Linear
    bias, plus the kernel-ready packed [W | b] operand (built once)."""
    n_input = state_dim + action_dim
    kw, kb = jax.random.split(key)
    gain = math.sqrt(2.0)                                   # gain('relu')
    bound = gain * math.sqrt(6.0 / (n_input + n_output))
    weight = jax.random.uniform(
        kw, (n_output, n_input), jnp.float32, -bound, bound)
    bb = 1.0 / math.sqrt(n_input)                           # nn.Linear bias init
    bias = jax.random.uniform(kb, (n_output,), jnp.float32, -bb, bb)
    wb = jnp.concatenate([weight, bias[:, None]], axis=1)   # (n_out, n_in + 1)
    return {"weight": weight, "bias": bias, "wb": wb}


def critic_forward_ref(params, state, action):
    sa = jnp.concatenate(
        [state.astype(jnp.float32), action.astype(jnp.float32)], axis=1)
    q = jnp.maximum(sa @ params["weight"].T + params["bias"], 0.0)
    return jnp.squeeze(q)


if __name__ == "__main__":
    key = jax.random.PRNGKey(0)
    k_p, k_s, k_a, k_s2, k_a2 = jax.random.split(key, 5)

    state_dim, action_dim, n_output = 6, 2, 1   # input_shape=(..,8), output_shape=(1,)
    params = init_params(k_p, state_dim, action_dim, n_output)

    # Path 1: small batch -> single full-array lane-dense block.
    B = 4
    state = jax.random.normal(k_s, (B, state_dim), jnp.float32)
    action = jax.random.normal(k_a, (B, action_dim), jnp.float32)
    q = jax.block_until_ready(critic_forward(params, state, action))
    q_ref = critic_forward_ref(params, state, action)
    assert q.shape == (B,), q.shape
    assert jnp.allclose(q, q_ref, atol=1e-5), "small-batch q mismatch"

    # Path 2: tiled path (>= 2 "parallel" blocks, ragged last block) exercised
    # at a small shape by overriding tm_max; also exercises the in-kernel
    # .float() cast with bf16 inputs.
    B2 = 1000
    state2 = jax.random.normal(k_s2, (B2, state_dim), jnp.float32).astype(jnp.bfloat16)
    action2 = jax.random.normal(k_a2, (B2, action_dim), jnp.float32).astype(jnp.bfloat16)
    q2 = jax.block_until_ready(critic_forward(params, state2, action2, tm_max=256))
    q2_ref = critic_forward_ref(params, state2, action2)
    assert q2.shape == (B2,), q2.shape
    assert jnp.allclose(q2, q2_ref, atol=1e-5), "tiled-batch q mismatch"

    print("KERNEL_OK")
</pallas_src>

<mosaic_0001>
module attributes {stable_mosaic.version = 11 : i64} {
  func.func @kernel(%arg0: i32, %arg1: memref<1x9xf32, #tpu.memory_space<smem>>, %arg2: memref<6x4xf32, #tpu.memory_space<vmem>>, %arg3: memref<2x4xf32, #tpu.memory_space<vmem>>, %arg4: memref<1x4xf32, #tpu.memory_space<vmem>>) attributes {dimension_semantics = [#tpu.dimension_semantics<parallel>], iteration_bounds = array<i64: 1>, scalar_prefetch = 0 : i64, scratch_operands = 0 : i64, tpu.core_type = #tpu.core_type<tc>, window_params = [{transform_indices = @transform_0, window_bounds = array<i64: 1, 9>}, {transform_indices = @transform_1, window_bounds = array<i64: 6, 4>}, {transform_indices = @transform_2, window_bounds = array<i64: 2, 4>}, {transform_indices = @transform_3, window_bounds = array<i64: 1, 4>}]} {
    %c0 = arith.constant 0 : index
    %c0_0 = arith.constant 0 : index
    %0 = vector.load %arg2[%c0, %c0_0] : memref<6x4xf32, #tpu.memory_space<vmem>>, vector<6x4xf32>
    %c0_1 = arith.constant 0 : index
    %c0_2 = arith.constant 0 : index
    %1 = vector.load %arg3[%c0_1, %c0_2] : memref<2x4xf32, #tpu.memory_space<vmem>>, vector<2x4xf32>
    %cst = arith.constant 0.000000e+00 : f32
    %2 = vector.broadcast %cst : f32 to vector<1x4xf32>
    %c0_3 = arith.constant 0 : index
    %c8 = arith.constant 8 : index
    %3 = memref.load %arg1[%c0_3, %c8] : memref<1x9xf32, #tpu.memory_space<smem>>
    %4 = vector.broadcast %3 : f32 to vector<1x4xf32>
    %5 = arith.addf %2, %4 : vector<1x4xf32>
    %c0_4 = arith.constant 0 : index
    %c0_5 = arith.constant 0 : index
    %6 = memref.load %arg1[%c0_4, %c0_5] : memref<1x9xf32, #tpu.memory_space<smem>>
    %7 = vector.extract_strided_slice %0 {offsets = [0, 0], sizes = [1, 4], strides = [1, 1]} : vector<6x4xf32> to vector<1x4xf32>
    %8 = vector.broadcast %6 : f32 to vector<1x4xf32>
    %9 = arith.mulf %8, %7 : vector<1x4xf32>
    %10 = arith.addf %5, %9 : vector<1x4xf32>
    %c0_6 = arith.constant 0 : index
    %c1 = arith.constant 1 : index
    %11 = memref.load %arg1[%c0_6, %c1] : memref<1x9xf32, #tpu.memory_space<smem>>
    %12 = vector.extract_strided_slice %0 {offsets = [1, 0], sizes = [1, 4], strides = [1, 1]} : vector<6x4xf32> to vector<1x4xf32>
    %13 = vector.broadcast %11 : f32 to vector<1x4xf32>
    %14 = arith.mulf %13, %12 : vector<1x4xf32>
    %15 = arith.addf %10, %14 : vector<1x4xf32>
    %c0_7 = arith.constant 0 : index
    %c2 = arith.constant 2 : index
    %16 = memref.load %arg1[%c0_7, %c2] : memref<1x9xf32, #tpu.memory_space<smem>>
    %17 = vector.extract_strided_slice %0 {offsets = [2, 0], sizes = [1, 4], strides = [1, 1]} : vector<6x4xf32> to vector<1x4xf32>
    %18 = vector.broadcast %16 : f32 to vector<1x4xf32>
    %19 = arith.mulf %18, %17 : vector<1x4xf32>
    %20 = arith.addf %15, %19 : vector<1x4xf32>
    %c0_8 = arith.constant 0 : index
    %c3 = arith.constant 3 : index
    %21 = memref.load %arg1[%c0_8, %c3] : memref<1x9xf32, #tpu.memory_space<smem>>
    %22 = vector.extract_strided_slice %0 {offsets = [3, 0], sizes = [1, 4], strides = [1, 1]} : vector<6x4xf32> to vector<1x4xf32>
    %23 = vector.broadcast %21 : f32 to vector<1x4xf32>
    %24 = arith.mulf %23, %22 : vector<1x4xf32>
    %25 = arith.addf %20, %24 : vector<1x4xf32>
    %c0_9 = arith.constant 0 : index
    %c4 = arith.constant 4 : index
    %26 = memref.load %arg1[%c0_9, %c4] : memref<1x9xf32, #tpu.memory_space<smem>>
    %27 = vector.extract_strided_slice %0 {offsets = [4, 0], sizes = [1, 4], strides = [1, 1]} : vector<6x4xf32> to vector<1x4xf32>
    %28 = vector.broadcast %26 : f32 to vector<1x4xf32>
    %29 = arith.mulf %28, %27 : vector<1x4xf32>
    %30 = arith.addf %25, %29 : vector<1x4xf32>
    %c0_10 = arith.constant 0 : index
    %c5 = arith.constant 5 : index
    %31 = memref.load %arg1[%c0_10, %c5] : memref<1x9xf32, #tpu.memory_space<smem>>
    %32 = vector.extract_strided_slice %0 {offsets = [5, 0], sizes = [1, 4], strides = [1, 1]} : vector<6x4xf32> to vector<1x4xf32>
    %33 = vector.broadcast %31 : f32 to vector<1x4xf32>
    %34 = arith.mulf %33, %32 : vector<1x4xf32>
    %35 = arith.addf %30, %34 : vector<1x4xf32>
    %c0_11 = arith.constant 0 : index
    %c6 = arith.constant 6 : index
    %36 = memref.load %arg1[%c0_11, %c6] : memref<1x9xf32, #tpu.memory_space<smem>>
    %37 = vector.extract_strided_slice %1 {offsets = [0, 0], sizes = [1, 4], strides = [1, 1]} : vector<2x4xf32> to vector<1x4xf32>
    %38 = vector.broadcast %36 : f32 to vector<1x4xf32>
    %39 = arith.mulf %38, %37 : vector<1x4xf32>
    %40 = arith.addf %35, %39 : vector<1x4xf32>
    %c0_12 = arith.constant 0 : index
    %c7 = arith.constant 7 : index
    %41 = memref.load %arg1[%c0_12, %c7] : memref<1x9xf32, #tpu.memory_space<smem>>
    %42 = vector.extract_strided_slice %1 {offsets = [1, 0], sizes = [1, 4], strides = [1, 1]} : vector<2x4xf32> to vector<1x4xf32>
    %43 = vector.broadcast %41 : f32 to vector<1x4xf32>
    %44 = arith.mulf %43, %42 : vector<1x4xf32>
    %45 = arith.addf %40, %44 : vector<1x4xf32>
    %cst_13 = arith.constant 0.000000e+00 : f32
    %46 = vector.broadcast %cst_13 : f32 to vector<1x4xf32>
    %47 = arith.maximumf %45, %46 : vector<1x4xf32>
    %c0_14 = arith.constant 0 : index
    %c0_15 = arith.constant 0 : index
    %48 = vector.load %arg4[%c0_14, %c0_15] : memref<1x4xf32, #tpu.memory_space<vmem>>, vector<1x4xf32>
    tpu.vector_store %arg4[%c0_14, %c0_15], %47 {strides = array<i32>} : memref<1x4xf32, #tpu.memory_space<vmem>>, vector<1x4xf32>,
    return
  }
  func.func @transform_0(%arg0: i32) -> (i32, i32) {
    %c0_i32 = arith.constant 0 : i32
    %c0_i32_0 = arith.constant 0 : i32
    %c0_i32_1 = arith.constant 0 : i32
    return %c0_i32, %c0_i32_0 : i32, i32
  }
  func.func @transform_1(%arg0: i32) -> (i32, i32) {
    %c0_i32 = arith.constant 0 : i32
    %c0_i32_0 = arith.constant 0 : i32
    return %c0_i32, %arg0 : i32, i32
  }
  func.func @transform_2(%arg0: i32) -> (i32, i32) {
    %c0_i32 = arith.constant 0 : i32
    %c0_i32_0 = arith.constant 0 : i32
    return %c0_i32, %arg0 : i32, i32
  }
  func.func @transform_3(%arg0: i32) -> (i32, i32) {
    %c0_i32 = arith.constant 0 : i32
    %c0_i32_0 = arith.constant 0 : i32
    return %c0_i32, %arg0 : i32, i32
  }
}

</mosaic_0001>

<bundles_post_ra>
// kernel: tpu_custom_call.1
= control target key start
LH: loop header
LB: loop body
LE: loop exit
PB: predicated region body
PF: predicated region fallthrough
CT: control target
= control target key end

     0   :  { %8 = vsyncpa [#allocation4], 0  ;;  %s192_s0 = inlined_call_operand.vmem [shape: f32[1,9], index: 0, kind: input, shape index: {}]   ;;  %s193_s1 = inlined_call_operand.vmem [shape: f32[6,4], index: 1, kind: input, shape index: {}]   ;;  %s194_s2 = inlined_call_operand.vmem [shape: f32[2,4], index: 2, kind: input, shape index: {}]   ;;  %s195_s3 = inlined_call_operand.hbm [shape: f32[1,4], index: 3, kind: output, shape index: {}]  }
   0x1   :  { %9 = vsyncpa [#allocation3], 0  ;;  %s16_s14 = sshll.u32 %s192_s0, 4  ;;  %s17_s14 = int_to_ptr.vmem [resolvable:$true] %s16_s14 }
   0x2   :  { %s111_s15 = scalar_lea.vmem %s17_s14, 16  ;;  %p116_p1 = scmp.lt.s32.totalorder %s17_s14, %s17_s14 }
   0x3   :  { %p112_p0 = scmp.ne.s32.totalorder %s17_s14, %s111_s15  ;;  %p117_p2 = scmp.lt.s32.totalorder %s111_s15, %s111_s15 }
   0x5   :  { %p118_p3 = por %p117_p2, %p116_p1 }
   0x7   :  { %p119_p4 = pnand %p118_p3, %p112_p0 }
   0x9   :  { %122 = shalt.err (!%p119_p4)
}
   0xa   :  { %s149_s16 = smov [#allocation2]  }
   0xb   :  { %19 = dma.vmem_to_smem %s17_s14, 16, %s149_s16, [#allocation4]  }
   0xc   :  { %145 = dma.done.wait [#allocation4], 16  }
   0xd   :  { %146 = vsyncadd [#allocation4], 4294967280 }
   0xe   :  { %27 = sfence }
   0xf   :  { %s101_s17 = sld [smem:[#allocation2 + $0x8]]  ;;  %s102_s19 = sld [smem:[#allocation2 + $0x1]]  ;;  %v28_v0 = vld [vmem:[%s193_s1] sm:$0x3f]  ;;  %vm84_vm0 = vcmask 24576  }
  0x10   :  { %s33_s18 = sld [smem:[#allocation2]]  ;;  %s103_s20 = sld [smem:[#allocation2 + $0x2]]  ;;  %v29_v19 = vld [vmem:[%s194_s2] sm:$0x3] }
  0x11   :  { %s104_s21 = sld [smem:[#allocation2 + $0x3]]  ;;  %s105_s22 = sld [smem:[#allocation2 + $0x4]] }
  0x12   :  { %s106_s0 = sld [smem:[#allocation2 + $0x5]]  ;;  %s108_s25 = sld [smem:[#allocation2 + $0x7]] }
  0x13   :  { %s107_s26 = sld [smem:[#allocation2 + $0x6]]  ;;  %s150_s28 = smov [#allocation5]  }
  0x14   :  { %s92_s29 = sshll.u32 %s150_s28, 4  ;;  %s93_s29 = int_to_ptr.vmem [resolvable:$true] %s92_s29 }
  0x15   :  { %v31_v1 = vstv %s101_s17  ;;  %v38_v3 = vstv %s102_s19  ;;  %s123_s2 = scalar_lea.vmem %s93_s29, 16  ;;  %s127_s30 = scalar_lea.vmem %s93_s29, 32 }
  0x16   :  { %v34_v2 = vstv %s33_s18  ;;  %v39_v5 = vmul.f32 %v38_v3, %v28_v0  ;;  %v45_v6 = vstv %s103_s20  ;;  %p124_p5 = scmp.ne.s32.totalorder %s93_s29, %s123_s2  ;;  %p128_p6 = scmp.lt.s32.totalorder %s93_s29, %s93_s29 }
  0x17   :  { %v35_v4 = vmul.f32 %v34_v2, %v28_v0  ;;  %v52_v7 = vstv %s104_s21  ;;  %v46_v8 = vmul.f32 %v45_v6, %v28_v0  ;;  %v59_v10 = vstv %s105_s22  ;;  %p129_p7 = scmp.lt.s32.totalorder %s127_s30, %s123_s2 }
  0x18   :  { %v53_v9 = vmul.f32 %v52_v7, %v28_v0  ;;  %v66_v11 = vstv %s106_s0  ;;  %v41_v13 = vrot.slane %v39_v5, 1  ;;  %v60_v14 = vmul.f32 %v59_v10, %v28_v0 }
  0x19   :  { %v36_v12 = vadd.f32 %v35_v4, %v31_v1  ;;  %v48_v15 = vrot.slane %v46_v8, 2  ;;  %v67_v18 = vmul.f32 %v66_v11, %v28_v0  ;;  %v77_v20 = vstv %s108_s25  ;;  %p130_p8 = por %p129_p7, %p128_p6 }
  0x1a   :  { %v55_v17 = vrot.slane %v53_v9, 3  ;;  %v62_v22 = vrot.slane %v60_v14, 4  ;;  %v73_v23 = vstv %s107_s26  ;;  %v78_v26 = vmul.f32 %v77_v20, %v29_v19 }
  0x1b   :  { %v43_v16 = vadd.f32 %v41_v13, %v36_v12  ;;  %v69_v25 = vrot.slane %v67_v18, 5  ;;  %v74_v28 = vmul.f32 %v73_v23, %v29_v19  ;;  %p131_p9 = pnand %p130_p8, %p124_p5 }
  0x1c   :  { %v80_v30 = vrot.slane %v78_v26, 1 }
  0x1d   :  { %v50_v21 = vadd.f32 %v48_v15, %v43_v16 }
  0x1f   :  { %v57_v24 = vadd.f32 %v55_v17, %v50_v21 }
  0x21   :  { %v64_v27 = vadd.f32 %v62_v22, %v57_v24 }
  0x23   :  { %v71_v29 = vadd.f32 %v69_v25, %v64_v27 }
  0x25   :  { %v75_v31 = vadd.f32 %v74_v28, %v71_v29 }
  0x27   :  { %v82_v32 = vadd.f32 %v80_v30, %v75_v31 }
  0x29   :  { %v83_v33 = vmax.f32 %v82_v32, 0.0 }
  0x2b   :  { %85 = vst.msk [vmem:[#allocation5] sm:$0x1] %vm84_vm0, %v83_v33 }
  0x2c   :  { %134 = shalt.err (!%p131_p9)
}
  0x2d   :  { %s135_s6 = scalar_lea.hbm %s195_s3, 16 }
  0x2e   :  { %p136_p10 = scmp.ne.s32.totalorder %s195_s3, %s135_s6  ;;  %p139_p11 = scmp.lt.u32.totalorder %s135_s6, %s195_s3 }
  0x30   :  { %p141_p12 = pnand %p139_p11, %p136_p10 }
  0x32   :  { %144 = shalt.err (!%p141_p12)
}
  0x33   :  { %95 = dma.vmem_to_hbm [thread:$0]  %s93_s29, 16, %s195_s3, [#allocation3]  }
  0x34   :  { %147 = dma.done.wait [#allocation3], 16  }
  0x35   :  { %148 = vsyncadd [#allocation3], 4294967280 }
  0x36   :  { %99 = vsyncpa [#allocation3], 1 }
  0x37   :  { %100 = vsyncpa [#allocation4], 1 }

</bundles_post_ra>
